<compile_context>
chip_gen: v5e
topology: v5e:2x2
jax: 0.10.0
libtpu: 0.0.40
codegen_flags: <defaults>
</compile_context>

<pallas_src>
import functools

import jax
import jax.numpy as jnp
from jax.experimental import pallas as pl
from jax.experimental.pallas import tpu as pltpu

# Tile caps. tm covers the whole batch when possible (weight stream read once);
# tn is lane-dense and a multiple of 256 (keeps v6e/v7x 256x256 MXU full,
# 128-aligned which is all v5e needs); tk only used in the large-K fallback.
_TM_CAP = 2048
_TN_CAP = 1024
_TK_CAP = 512


def _round_up(v, m):
    return -(-v // m) * m


def _largest_aligned_divisor(dim, cap, granule):
    """Largest t <= cap with dim % t == 0 and t % granule == 0.
    Assumes dim is a multiple of granule (so granule is a valid fallback)."""
    cap = min(cap, dim)
    t = cap - cap % granule
    while t > granule and dim % t != 0:
        t -= granule
    return max(t, granule)


def _vmem_budget():
    """(tile-budget bytes, scoped vmem_limit_bytes) from physical VMEM, so the
    limit never exceeds the part's capacity (v7x has only 64 MiB per core)."""
    try:
        cap = pltpu.get_tpu_info().vmem_capacity_bytes
    except Exception:
        cap = 64 * 1024 * 1024  # assume the smallest part (v7x) if unknown
    limit = min(cap * 3 // 4, 96 * 1024 * 1024)
    return int(limit * 0.85), int(limit)


# ---------------------------------------------------------------------------
# Kernels
# ---------------------------------------------------------------------------

def _proj_kernel_fullk(x_ref, w_ref, o_ref):
    """out tile = x_tile @ W_tile with the full reduction in one MXU pass:
    no accumulator round-trip, no init/finalize branches."""
    o_ref[...] = jnp.dot(x_ref[...], w_ref[...],
                         preferred_element_type=jnp.float32).astype(o_ref.dtype)


def _proj_kernel_acc(x_ref, w_ref, o_ref, acc_ref, *, tk):
    """Large-K fallback: x stays resident across the reduction (its BlockSpec
    ignores k), only W_cat is streamed per k step; f32 VMEM accumulator."""
    k = pl.program_id(2)

    @pl.when(k == 0)
    def _init():
        acc_ref[...] = jnp.zeros_like(acc_ref)

    start = pl.multiple_of(k * tk, tk)
    acc_ref[...] += jnp.dot(x_ref[:, pl.ds(start, tk)], w_ref[...],
                            preferred_element_type=jnp.float32)

    @pl.when(k == pl.num_programs(2) - 1)
    def _finalize():
        o_ref[...] = acc_ref[...].astype(o_ref.dtype)


# ---------------------------------------------------------------------------
# Parameter-init-time weight preparation (cached alongside the parameters)
# ---------------------------------------------------------------------------

def prepare_projection_weights(weights, compute_dtype=jnp.bfloat16):
    """One-time relayout of the (H, D, D) head matrices into a fused (K, H*D)
    weight:  W_cat[k, h*D + j] = weights[h, j, k] = (W_h^T)[k, j], so
        x @ W_cat == concat_h(x @ W_h^T)   (lane-dense output slab).

    Call ONCE at init and cache the result: the kernel is weight-streaming
    bound, so redoing this transpose per call would dominate HBM traffic.
    bf16 by default halves weight bytes (MXU still accumulates in f32).
    Dims that may have to be split are pre-padded to the (8, 128) granule.
    """
    H, D, D2 = weights.shape
    assert D == D2, "projection matrices must be square (in_dim, in_dim)"
    K, N = D, H * D
    w_cat = jnp.transpose(weights, (2, 0, 1)).reshape(K, N)
    if compute_dtype is not None:
        w_cat = w_cat.astype(compute_dtype)
    K_pad = K if K <= _TK_CAP else _round_up(K, 128)
    N_pad = N if N <= _TN_CAP else _round_up(N, 128)
    if (K_pad, N_pad) != (K, N):
        w_cat = jnp.pad(w_cat, ((0, K_pad - K), (0, N_pad - N)))
    return w_cat


# ---------------------------------------------------------------------------
# Forward
# ---------------------------------------------------------------------------

def orthogonal_projection_heads(x, w_cat, num_heads, *, out_dtype=None):
    """x: (B, D);  w_cat: prepared fused weight  ->  (B, num_heads, D).
    Equivalent to torch.stack([F.linear(x, W_h) for h], dim=1)."""
    assert x.ndim == 2, "expects (batch, in_dim)"
    B, D = x.shape
    K, N = D, num_heads * D
    K_pad, N_pad = w_cat.shape
    assert K_pad >= K and N_pad >= N, "w_cat does not match (num_heads, in_dim)"

    out_dtype = out_dtype or x.dtype
    in_dtype = w_cat.dtype                      # stream x in the cached weight dtype
    in_sz = jnp.dtype(in_dtype).itemsize
    out_sz = jnp.dtype(out_dtype).itemsize

    B_pad = B if B <= _TM_CAP else _round_up(B, 8)
    xk = x.astype(in_dtype)
    if (B_pad, K_pad) != (B, K):
        xk = jnp.pad(xk, ((0, B_pad - B), (0, K_pad - K)))

    budget, vmem_limit = _vmem_budget()

    # tm = whole batch whenever it fits -> W_cat is read from HBM exactly once.
    tm = B_pad if B_pad <= _TM_CAP else _largest_aligned_divisor(B_pad, _TM_CAP, 8)
    tn = N_pad if N_pad <= _TN_CAP else _largest_aligned_divisor(N_pad, _TN_CAP, 128)

    def fullk_bytes(tn_):
        # double-buffered x and W tiles + double-buffered output tile
        return 2 * (tm * K_pad + K_pad * tn_) * in_sz + 2 * tm * tn_ * out_sz

    def make_cost(tm_):
        m_tiles = B_pad // tm_
        return pl.CostEstimate(
            flops=2 * B_pad * N_pad * K_pad,
            transcendentals=0,
            # x read once per batch tile; W_cat streamed once per batch tile;
            # output written once.
            bytes_accessed=(B_pad * K_pad * in_sz
                            + m_tiles * K_pad * N_pad * in_sz
                            + B_pad * N_pad * out_sz),
        )

    # Prefer full-K tiles (no accumulator). Shrink tn before giving up.
    use_fullk = (K_pad % 128 != 0) or (fullk_bytes(tn) <= budget)
    while (not use_fullk) and tn > 128 and N_pad % 128 == 0:
        tn = _largest_aligned_divisor(N_pad, tn // 2, 128)
        use_fullk = fullk_bytes(tn) <= budget

    if use_fullk:
        vmem_est = fullk_bytes(tn)
        grid = (B_pad // tm, N_pad // tn)
        out = pl.pallas_call(
            _proj_kernel_fullk,
            out_shape=jax.ShapeDtypeStruct((B_pad, N_pad), out_dtype),
            grid_spec=pltpu.PrefetchScalarGridSpec(
                num_scalar_prefetch=0,
                grid=grid,
                in_specs=[
                    pl.BlockSpec((tm, K_pad), lambda m, n: (m, 0)),  # x: resident per m
                    pl.BlockSpec((K_pad, tn), lambda m, n: (0, n)),  # W_cat: streamed
                ],
                out_specs=pl.BlockSpec((tm, tn), lambda m, n: (m, n)),
            ),
            compiler_params=pltpu.CompilerParams(
                # M first: with small B the M grid is 1, so the v7x 2-TC split
                # lands on N (each core gets half the weight stream).
                dimension_semantics=("parallel", "parallel"),
                vmem_limit_bytes=vmem_limit if vmem_est > 16 * 1024 * 1024 else None,
            ),
            cost_estimate=make_cost(tm),
        )(xk, w_cat)
    else:
        # Large-K fallback: K-tiled reduction, x resident, f32 accumulator.
        tn = N_pad if N_pad <= _TN_CAP else _largest_aligned_divisor(N_pad, _TN_CAP, 128)
        tk = _largest_aligned_divisor(K_pad, _TK_CAP, 128)

        def acc_bytes(tm_, tn_, tk_):
            return (2 * tm_ * K_pad * in_sz + 2 * tk_ * tn_ * in_sz
                    + 2 * tm_ * tn_ * out_sz + tm_ * tn_ * 4)

        while acc_bytes(tm, tn, tk) > budget and tk > 128:
            tk = _largest_aligned_divisor(K_pad, tk // 2, 128)
        while acc_bytes(tm, tn, tk) > budget and tn > 128 and N_pad % 128 == 0:
            tn = _largest_aligned_divisor(N_pad, tn // 2, 128)
        while acc_bytes(tm, tn, tk) > budget and tm > 8 and B_pad % 8 == 0:
            tm = _largest_aligned_divisor(B_pad, tm // 2, 8)

        vmem_est = acc_bytes(tm, tn, tk)
        grid = (B_pad // tm, N_pad // tn, K_pad // tk)
        # TODO(synk): consider pipeline_mode=pl.Buffered(3) on the W_cat spec if
        # profiling shows exposed DMA at k-step boundaries (budget vs v7x VMEM).
        out = pl.pallas_call(
            functools.partial(_proj_kernel_acc, tk=tk),
            out_shape=jax.ShapeDtypeStruct((B_pad, N_pad), out_dtype),
            grid_spec=pltpu.PrefetchScalarGridSpec(
                num_scalar_prefetch=0,
                grid=grid,
                in_specs=[
                    pl.BlockSpec((tm, K_pad), lambda m, n, k: (m, 0)),  # x resident
                    pl.BlockSpec((tk, tn), lambda m, n, k: (k, n)),     # W_cat streamed
                ],
                out_specs=pl.BlockSpec((tm, tn), lambda m, n, k: (m, n)),
                scratch_shapes=[pltpu.VMEM((tm, tn), jnp.float32)],
            ),
            compiler_params=pltpu.CompilerParams(
                dimension_semantics=("parallel", "parallel", "arbitrary"),
                vmem_limit_bytes=vmem_limit if vmem_est > 16 * 1024 * 1024 else None,
            ),
            cost_estimate=make_cost(tm),
        )(xk, w_cat)

    if (B_pad, N_pad) != (B, N):
        out = out[:B, :N]
    # (B, H*D) -> (B, H, D): contiguous reshape == torch.stack(projections, dim=1)
    return out.reshape(B, num_heads, D)


def make_orthogonal_weights(key, num_heads, in_dim, dtype=jnp.float32):
    """Deterministic stand-in for nn.init.orthogonal_ on each head matrix."""
    mats = []
    for h in range(num_heads):
        k = jax.random.fold_in(key, h)
        a = jax.random.normal(k, (in_dim, in_dim), dtype=jnp.float32)
        q, r = jnp.linalg.qr(a)
        q = q * jnp.sign(jnp.diag(r))[None, :]   # sign-fix for determinism
        mats.append(q.astype(dtype))
    return jnp.stack(mats, axis=0)  # (H, D, D)


if __name__ == "__main__":
    key = jax.random.PRNGKey(0)
    num_heads, in_dim, batch = 4, 32, 8

    k_x, k_w = jax.random.split(key)
    x = jax.random.normal(k_x, (batch, in_dim), dtype=jnp.float32)
    weights = make_orthogonal_weights(k_w, num_heads, in_dim)

    # reference: stack([x @ W_h.T for h], dim=1)
    ref = jnp.einsum("bd,hed->bhe", x, weights)

    # f32 verification path (strict tolerance)
    w_cat_f32 = prepare_projection_weights(weights, compute_dtype=jnp.float32)
    out_f32 = jax.block_until_ready(
        orthogonal_projection_heads(x, w_cat_f32, num_heads))
    assert out_f32.shape == (batch, num_heads, in_dim), out_f32.shape
    assert jnp.allclose(out_f32, ref, atol=1e-5, rtol=1e-5), float(
        jnp.max(jnp.abs(out_f32 - ref)))

    # production path: bf16 streaming of x / W_cat, f32 MXU accumulation
    w_cat_bf16 = prepare_projection_weights(weights)  # default bf16
    out_bf16 = jax.block_until_ready(
        orthogonal_projection_heads(x, w_cat_bf16, num_heads))
    assert out_bf16.shape == (batch, num_heads, in_dim), out_bf16.shape
    assert jnp.allclose(out_bf16, ref, atol=5e-2, rtol=5e-2), float(
        jnp.max(jnp.abs(out_bf16 - ref)))

    print("KERNEL_OK")
</pallas_src>

<mosaic_0001>
module attributes {stable_mosaic.version = 11 : i64} {
  func.func @_proj_kernel_fullk(%arg0: i32, %arg1: i32, %arg2: memref<8x32xf32, #tpu.memory_space<vmem>>, %arg3: memref<32x128xf32, #tpu.memory_space<vmem>>, %arg4: memref<8x128xf32, #tpu.memory_space<vmem>>) attributes {dimension_semantics = [#tpu.dimension_semantics<parallel>, #tpu.dimension_semantics<parallel>], iteration_bounds = array<i64: 1, 1>, scalar_prefetch = 0 : i64, scratch_operands = 0 : i64, tpu.core_type = #tpu.core_type<tc>, window_params = [{transform_indices = @transform_0, window_bounds = array<i64: 8, 32>}, {transform_indices = @transform_1, window_bounds = array<i64: 32, 128>}, {transform_indices = @transform_2, window_bounds = array<i64: 8, 128>}]} {
    %c0 = arith.constant 0 : index
    %c0_0 = arith.constant 0 : index
    %0 = vector.load %arg2[%c0, %c0_0] : memref<8x32xf32, #tpu.memory_space<vmem>>, vector<8x32xf32>
    %c0_1 = arith.constant 0 : index
    %c0_2 = arith.constant 0 : index
    %1 = vector.load %arg3[%c0_1, %c0_2] : memref<32x128xf32, #tpu.memory_space<vmem>>, vector<32x128xf32>
    %cst = arith.constant dense<0.000000e+00> : vector<8x128xf32>
    %2 = tpu.matmul %0, %1, %cst {dimension_numbers = #tpu.dot_dimension_numbers<[1], [0], [0], [1], [0, 0, 1, 1], [], []>} : vector<8x32xf32>, vector<32x128xf32>, vector<8x128xf32> -> vector<8x128xf32>
    %c0_3 = arith.constant 0 : index
    %c0_4 = arith.constant 0 : index
    %3 = vector.load %arg4[%c0_3, %c0_4] : memref<8x128xf32, #tpu.memory_space<vmem>>, vector<8x128xf32>
    tpu.vector_store %arg4[%c0_3, %c0_4], %2 {strides = array<i32>} : memref<8x128xf32, #tpu.memory_space<vmem>>, vector<8x128xf32>,
    return
  }
  func.func @transform_0(%arg0: i32, %arg1: i32) -> (i32, i32) {
    %c0_i32 = arith.constant 0 : i32
    %c0_i32_0 = arith.constant 0 : i32
    return %arg0, %c0_i32 : i32, i32
  }
  func.func @transform_1(%arg0: i32, %arg1: i32) -> (i32, i32) {
    %c0_i32 = arith.constant 0 : i32
    %c0_i32_0 = arith.constant 0 : i32
    return %c0_i32, %arg1 : i32, i32
  }
  func.func @transform_2(%arg0: i32, %arg1: i32) -> (i32, i32) {
    %c0_i32 = arith.constant 0 : i32
    return %arg0, %arg1 : i32, i32
  }
}

</mosaic_0001>

<bundles_post_ra>
// kernel: tpu_custom_call.1
= control target key start
LH: loop header
LB: loop body
LE: loop exit
PB: predicated region body
PF: predicated region fallthrough
CT: control target
= control target key end

     0   :  { %7 = vsyncpa [#allocation3], 0  ;;  %s203_s0 = inlined_call_operand.hbm [shape: f32[8,32], index: 0, kind: input, shape index: {}]   ;;  %s204_s1 = inlined_call_operand.hbm [shape: f32[32,128], index: 1, kind: input, shape index: {}]   ;;  %s205_s2 = inlined_call_operand.hbm [shape: f32[8,128], index: 2, kind: output, shape index: {}]  }
   0x1   :  { %8 = vsyncpa [#allocation6], 0 }
   0x2   :  { %9 = vsyncpa [#allocation4], 0  ;;  %s15_s11 = sshll.u32 %s203_s0, 4  ;;  %s174_s12 = smov [#allocation2]   ;;  %s16_s11 = int_to_ptr.hbm [resolvable:$true] %s15_s11 }
   0x3   :  { %s17_s13 = sshll.u32 %s174_s12, 4  ;;  %s25_s16 = sshll.u32 %s204_s1, 4  ;;  %s18_s13 = int_to_ptr.vmem [resolvable:$true] %s17_s13  ;;  %s26_s16 = int_to_ptr.hbm [resolvable:$true] %s25_s16 }
   0x4   :  { %20 = dma.hbm_to_vmem [thread:$0]  %s16_s11, 128, %s18_s13, [#allocation3]  }
   0x5   :  { %s175_s17 = smov [#allocation5]   ;;  %s176_s19 = smov 128  }
   0x6   :  { %s27_s18 = sshll.u32 %s175_s17, 4  ;;  %s177_s20 = smov 8   ;;  %s28_s18 = int_to_ptr.vmem [resolvable:$true] %s27_s18 }
   0x7   :  { %33 = dma.hbm_to_vmem [thread:$0]  %s26_s16, 512, %s28_s18, [#allocation6], %s176_s19, %s176_s19, %s177_s20  }
   0x8   :  { %168 = dma.done.wait [#allocation3], 128  }
   0x9   :  { %169 = vsyncadd [#allocation3], 4294967168 }
   0xa   :  { %170 = dma.done.wait [#allocation6], 512  }
   0xb   :  { %171 = vsyncadd [#allocation6], 4294966784  ;;  %v46_v0 = vld [vmem:[#allocation5 + $0x18] sm:$0xff]  ;;  %v45_v1 = vld [vmem:[#allocation5 + $0x10] sm:$0xff]  ;;  %vm47_vm0 = vcmask 261120   ;;  %s178_s0 = smov [#allocation7]  }
   0xc   :  { %63 = vmatpush.msra.mxu0 %v46_v0  ;;  %v44_v2 = vld [vmem:[#allocation5 + $0x8] sm:$0xff]  ;;  %v43_v3 = vld [vmem:[#allocation5] sm:$0xff]  ;;  %v42_v4 = vld [vmem:[#allocation2] sm:$0xff]  ;;  %s77_s1 = sshll.u32 %s178_s0, 4  ;;  %s79_s23 = sshll.u32 %s205_s2, 4  ;;  %s78_s1 = int_to_ptr.vmem [resolvable:$true] %s77_s1  ;;  %s80_s23 = int_to_ptr.hbm [resolvable:$true] %s79_s23 }
   0xe   :  { %64 = vmatpush.msra.mxu0 %v45_v1 }
  0x10   :  { %65 = vmatpush.msra.mxu0 %v44_v2 }
  0x12   :  { %66 = vmatpush.msra.mxu0 %v43_v3 }
  0x13   :  { %90 = vmatmul.msk.f32.vlgmr.msra.gmra.mxu0 %vm47_vm0, %v42_v4 }
  0x90   :  { %v68_v5 = vpop.f32.mrf.mxu0 }
  0x91   :  { %71 = vst [vmem:[#allocation7] sm:$0xff] %v68_v5 }
  0x92   :  { %82 = dma.vmem_to_hbm [thread:$0]  %s78_s1, 128, %s80_s23, [#allocation4]  }
  0x93   :  { %172 = dma.done.wait [#allocation4], 128  }
  0x94   :  { %173 = vsyncadd [#allocation4], 4294967168 }
  0x95   :  { %87 = vsyncpa [#allocation3], 1 }
  0x96   :  { %88 = vsyncpa [#allocation6], 1 }
  0x97   :  { %89 = vsyncpa [#allocation4], 1 }

</bundles_post_ra>
